<compile_context>
chip_gen: v7x
topology: tpu7x:2x2x1
jax: 0.10.0
libtpu: 0.0.40
codegen_flags: <defaults>
</compile_context>

<pallas_src>
import functools

import jax
import jax.numpy as jnp
from jax.experimental import pallas as pl
from jax.experimental.pallas import tpu as pltpu


def _round_up(x, m):
    return ((x + m - 1) // m) * m


def _cls_head_kernel(x_ref, wt_ref, b_ref, labels_ref,
                     logits_ref, per_row_loss_ref, *,
                     num_cls, compute_loss, w_resident, tk):
    """grid = (row_blocks, k_blocks); the feature/reduction axis k is innermost."""
    k = pl.program_id(1)

    @pl.when(k == 0)
    def _():
        logits_ref[...] = jnp.zeros_like(logits_ref)

    if w_resident:
        # W^T lives fully in VMEM (constant block index) -> slice the k-tile.
        off = pl.multiple_of(k * tk, 128)
        w_tile = wt_ref[:, pl.ds(off, tk)]
    else:
        w_tile = wt_ref[...]

    # Lane-dense MXU contraction: x (tb, tk) x w^T (C_pad, tk), contract on tk.
    logits_ref[...] += jax.lax.dot_general(
        x_ref[...], w_tile,
        dimension_numbers=(((1,), (1,)), ((), ())),
        preferred_element_type=jnp.float32)

    @pl.when(k == pl.num_programs(1) - 1)
    def _():
        logits = logits_ref[...] + b_ref[...]                      # (tb, C_pad) f32
        logits_ref[...] = logits

        if compute_loss:
            # CrossEntropyLoss per row: logsumexp(logits) - logits[label]
            cls_ids = jax.lax.broadcasted_iota(jnp.int32, logits.shape, 1)
            if num_cls < logits.shape[1]:
                masked = jnp.where(cls_ids < num_cls, logits, -1e30)  # drop pad classes
            else:
                masked = logits
            m = jnp.max(masked, axis=-1, keepdims=True)
            lse = m + jnp.log(jnp.sum(jnp.exp(masked - m), axis=-1, keepdims=True))
            # Labels always index real classes, where masked == logits.
            picked = jnp.sum(jnp.where(cls_ids == labels_ref[...], masked, 0.0),
                             axis=-1, keepdims=True)
            per_row_loss_ref[...] = lse - picked
        else:
            per_row_loss_ref[...] = jnp.zeros_like(per_row_loss_ref)


def prepare_classifier_params(w, b, *, compute_dtype=jnp.float32):
    """One-time weight prep: W^T padded to (C_pad, D128), bias padded to (1, C_pad).

    Do this once per model (outside the per-step forward) so no transpose/pad
    of the weight matrix sits on the forward critical path.
    """
    D, num_cls = w.shape
    C_pad = _round_up(num_cls, 128)           # lane-dense logits / MXU width
    D128 = _round_up(D, 128)
    wt_p = jnp.zeros((C_pad, D128), compute_dtype).at[:num_cls, :D].set(
        w.T.astype(compute_dtype))            # (num_cls, D): D on lanes
    b_p = jnp.zeros((1, C_pad), jnp.float32).at[0, :num_cls].set(
        b.astype(jnp.float32))
    return {'wt_p': wt_p, 'b_p': b_p, 'num_cls': num_cls, 'D': D,
            'compute_dtype': compute_dtype}


def hf_classification_forward(x_nchw, params, labels=None, *,
                              max_block_rows=256,
                              vmem_block_budget_bytes=24 * 1024 * 1024,
                              vmem_limit_bytes=48 * 1024 * 1024):
    """Returns {'loss': ..., 'logits': ...} exactly like HFClassificationModel.forward."""
    wt_p, b_p = params['wt_p'], params['b_p']
    num_cls, D = params['num_cls'], params['D']
    compute_dtype = params['compute_dtype']
    itemsize = jnp.dtype(compute_dtype).itemsize

    B = x_nchw.shape[0]
    C_pad, D128 = wt_p.shape

    # ---- Row tiling: sublane-aligned; expose >=2 row blocks for v7x megacore.
    B8 = _round_up(B, 8)
    tb = min(_round_up(max_block_rows, 8), B8)
    if (B8 + tb - 1) // tb < 2 and B8 >= 16:
        tb = _round_up(-(-B8 // 2), 8)
    B_pad = _round_up(B, tb)

    # ---- VMEM budgeting (includes resident outputs/accumulator, bias, labels).
    fixed_bytes = 2 * (tb * C_pad * 4      # resident f32 logits accumulator / output
                       + tb * 4            # per-row loss
                       + C_pad * 4         # bias
                       + tb * 4)           # labels
    budget = max(vmem_block_budget_bytes - fixed_bytes, 2 * tb * 128 * itemsize)

    w_bytes_resident = 2 * C_pad * D128 * itemsize
    w_resident = w_bytes_resident <= budget // 2
    if w_resident:
        budget_x = budget - w_bytes_resident
        bytes_per_128cols = 2 * tb * 128 * itemsize
    else:
        budget_x = budget
        bytes_per_128cols = 2 * (tb + C_pad) * 128 * itemsize

    # ---- Feature tile: largest multiple of 128 within budget that divides D128,
    # so x never needs feature padding when D % 128 == 0.
    m = D128 // 128
    max_cols_blocks = max(1, budget_x // bytes_per_128cols)
    d = 1
    for cand in range(min(m, max_cols_blocks), 0, -1):
        if m % cand == 0:
            d = cand
            break
    tk = 128 * d
    k_blocks = m // d

    # ---- Inputs: pad x only when actually required (common case: no copy).
    x_flat = x_nchw.reshape(B, D).astype(compute_dtype)   # view + (maybe) cast
    if B_pad != B or D128 != D:
        x_in = jnp.pad(x_flat, ((0, B_pad - B), (0, D128 - D)))
    else:
        x_in = x_flat

    labels_p = jnp.zeros((B_pad, 1), jnp.int32)
    if labels is not None:
        labels_p = labels_p.at[:B, 0].set(labels.reshape(-1).astype(jnp.int32))

    grid = (B_pad // tb, k_blocks)

    kernel = functools.partial(_cls_head_kernel, num_cls=num_cls,
                               compute_loss=labels is not None,
                               w_resident=w_resident, tk=tk)

    if w_resident:
        wt_spec = pl.BlockSpec((C_pad, D128), lambda i, k: (0, 0))   # fetched once
    else:
        wt_spec = pl.BlockSpec((C_pad, tk), lambda i, k: (0, k))     # streamed per k

    logits_p, per_row_loss = pl.pallas_call(
        kernel,
        out_shape=(jax.ShapeDtypeStruct((B_pad, C_pad), jnp.float32),
                   jax.ShapeDtypeStruct((B_pad, 1), jnp.float32)),
        grid_spec=pltpu.PrefetchScalarGridSpec(
            num_scalar_prefetch=0,
            grid=grid,
            in_specs=[
                pl.BlockSpec((tb, tk), lambda i, k: (i, k)),       # x tile
                wt_spec,                                           # w^T (lane-dense)
                pl.BlockSpec((1, C_pad), lambda i, k: (0, 0)),     # bias (resident)
                pl.BlockSpec((tb, 1), lambda i, k: (i, 0)),        # labels (resident)
            ],
            out_specs=(
                pl.BlockSpec((tb, C_pad), lambda i, k: (i, 0)),    # logits (accumulator)
                pl.BlockSpec((tb, 1), lambda i, k: (i, 0)),        # per-row CE loss
            ),
        ),
        compiler_params=pltpu.CompilerParams(
            dimension_semantics=("parallel", "arbitrary"),
            vmem_limit_bytes=vmem_limit_bytes),
    )(x_in, wt_p, b_p, labels_p)

    logits = logits_p[:B, :num_cls]
    if labels is None:
        return {'loss': None, 'logits': logits}
    return {'loss': jnp.mean(per_row_loss[:B, 0]), 'logits': logits}


def _reference(x_nchw, w, b, labels):
    B = x_nchw.shape[0]
    logits = x_nchw.reshape(B, -1).astype(jnp.float32) @ w + b
    lse = jax.scipy.special.logsumexp(logits, axis=-1)
    picked = jnp.take_along_axis(logits, labels[:, None], axis=-1)[:, 0]
    return logits, jnp.mean(lse - picked)


if __name__ == "__main__":
    # Small shapes consistent with an NCHW classification forward.
    B, C, H, W = 2, 4, 16, 16
    num_cls = 8
    D = C * H * W

    key = jax.random.PRNGKey(0)
    kx, kw, kb, kl = jax.random.split(key, 4)
    x = jax.random.normal(kx, (B, C, H, W), dtype=jnp.float32)
    w = jax.random.normal(kw, (D, num_cls), dtype=jnp.float32) * 0.02
    b = jax.random.normal(kb, (num_cls,), dtype=jnp.float32) * 0.02
    labels = jax.random.randint(kl, (B,), 0, num_cls, dtype=jnp.int32)

    # Weight prep happens once (would be cached on the model object).
    params = prepare_classifier_params(w, b, compute_dtype=jnp.float32)

    out = hf_classification_forward(x, params, labels)
    logits = jax.block_until_ready(out['logits'])
    loss = jax.block_until_ready(out['loss'])

    ref_logits, ref_loss = _reference(x, w, b, labels)
    assert jnp.allclose(logits, ref_logits, atol=1e-4, rtol=1e-4)
    assert jnp.allclose(loss, ref_loss, atol=1e-4, rtol=1e-4)

    # labels=None path: loss must be None, logits identical.
    out_nl = hf_classification_forward(x, params, None)
    jax.block_until_ready(out_nl['logits'])
    assert out_nl['loss'] is None
    assert jnp.allclose(out_nl['logits'], ref_logits, atol=1e-4, rtol=1e-4)

    print("KERNEL_OK")
</pallas_src>

<mosaic_0001>
module attributes {stable_mosaic.version = 11 : i64} {
  func.func @_cls_head_kernel(%arg0: i32, %arg1: i32, %arg2: memref<8x1024xf32, #tpu.memory_space<vmem>>, %arg3: memref<128x1024xf32, #tpu.memory_space<vmem>>, %arg4: memref<1x128xf32, #tpu.memory_space<vmem>>, %arg5: memref<8x1xi32, #tpu.memory_space<vmem>>, %arg6: memref<8x128xf32, #tpu.memory_space<vmem>>, %arg7: memref<8x1xf32, #tpu.memory_space<vmem>>) attributes {dimension_semantics = [#tpu.dimension_semantics<parallel>, #tpu.dimension_semantics<arbitrary>], iteration_bounds = array<i64: 1, 1>, scalar_prefetch = 0 : i64, scratch_operands = 0 : i64, tpu.core_type = #tpu.core_type<tc>, window_params = [{transform_indices = @transform_0, window_bounds = array<i64: 8, 1024>}, {pipeline_mode = #tpu.pipeline_mode<synchronous>, transform_indices = @transform_1, window_bounds = array<i64: 128, 1024>}, {pipeline_mode = #tpu.pipeline_mode<synchronous>, transform_indices = @transform_2, window_bounds = array<i64: 1, 128>}, {transform_indices = @transform_3, window_bounds = array<i64: 8, 1>}, {transform_indices = @transform_4, window_bounds = array<i64: 8, 128>}, {transform_indices = @transform_5, window_bounds = array<i64: 8, 1>}]} {
    %c0_i32 = arith.constant 0 : i32
    %0 = arith.cmpi eq, %arg1, %c0_i32 : i32
    %1 = arith.extui %0 : i1 to i32
    %c0_i32_0 = arith.constant 0 : i32
    %2 = arith.cmpi ne, %1, %c0_i32_0 : i32
    scf.if %2 {
      %cst_9 = arith.constant 0.000000e+00 : f32
      %15 = vector.broadcast %cst_9 : f32 to vector<8x128xf32>
      %c0_10 = arith.constant 0 : index
      %c0_11 = arith.constant 0 : index
      %16 = vector.load %arg6[%c0_10, %c0_11] : memref<8x128xf32, #tpu.memory_space<vmem>>, vector<8x128xf32>
      tpu.vector_store %arg6[%c0_10, %c0_11], %15 {strides = array<i32>} : memref<8x128xf32, #tpu.memory_space<vmem>>, vector<8x128xf32>,
    } else {
    }
    %c1024_i32 = arith.constant 1024 : i32
    %3 = arith.muli %arg1, %c1024_i32 : i32
    %4 = tpu.assume_multiple %3, 128 : i32
    %c0 = arith.constant 0 : index
    %5 = arith.index_cast %4 : i32 to index
    %6 = vector.load %arg3[%c0, %5] : memref<128x1024xf32, #tpu.memory_space<vmem>>, vector<128x1024xf32>
    %c0_1 = arith.constant 0 : index
    %c0_2 = arith.constant 0 : index
    %7 = vector.load %arg6[%c0_1, %c0_2] : memref<8x128xf32, #tpu.memory_space<vmem>>, vector<8x128xf32>
    %c0_3 = arith.constant 0 : index
    %c0_4 = arith.constant 0 : index
    %8 = vector.load %arg2[%c0_3, %c0_4] : memref<8x1024xf32, #tpu.memory_space<vmem>>, vector<8x1024xf32>
    %cst = arith.constant dense<0.000000e+00> : vector<8x128xf32>
    %9 = tpu.matmul %8, %6, %cst {dimension_numbers = #tpu.dot_dimension_numbers<[1], [1], [0], [0], [0, 0, 1, 0], [], []>} : vector<8x1024xf32>, vector<128x1024xf32>, vector<8x128xf32> -> vector<8x128xf32>
    %10 = arith.addf %7, %9 : vector<8x128xf32>
    %c0_5 = arith.constant 0 : index
    %c0_6 = arith.constant 0 : index
    %11 = vector.load %arg6[%c0_5, %c0_6] : memref<8x128xf32, #tpu.memory_space<vmem>>, vector<8x128xf32>
    tpu.vector_store %arg6[%c0_5, %c0_6], %10 {strides = array<i32>} : memref<8x128xf32, #tpu.memory_space<vmem>>, vector<8x128xf32>,
    %c0_i32_7 = arith.constant 0 : i32
    %12 = arith.cmpi eq, %arg1, %c0_i32_7 : i32
    %13 = arith.extui %12 : i1 to i32
    %c0_i32_8 = arith.constant 0 : i32
    %14 = arith.cmpi ne, %13, %c0_i32_8 : i32
    scf.if %14 {
      %c0_9 = arith.constant 0 : index
      %c0_10 = arith.constant 0 : index
      %15 = vector.load %arg6[%c0_9, %c0_10] : memref<8x128xf32, #tpu.memory_space<vmem>>, vector<8x128xf32>
      %c0_11 = arith.constant 0 : index
      %c0_12 = arith.constant 0 : index
      %16 = vector.load %arg4[%c0_11, %c0_12] : memref<1x128xf32, #tpu.memory_space<vmem>>, vector<1x128xf32>
      %17 = vector.broadcast %16 : vector<1x128xf32> to vector<8x128xf32>
      %18 = arith.addf %15, %17 : vector<8x128xf32>
      %c0_13 = arith.constant 0 : index
      %c0_14 = arith.constant 0 : index
      %19 = vector.load %arg6[%c0_13, %c0_14] : memref<8x128xf32, #tpu.memory_space<vmem>>, vector<8x128xf32>
      tpu.vector_store %arg6[%c0_13, %c0_14], %18 {strides = array<i32>} : memref<8x128xf32, #tpu.memory_space<vmem>>, vector<8x128xf32>,
      %20 = tpu.iota {dimensions = array<i32: 1>} : vector<8x128xi32>
      %c8_i32 = arith.constant 8 : i32
      %21 = vector.broadcast %c8_i32 : i32 to vector<8x128xi32>
      %22 = arith.cmpi slt, %20, %21 : vector<8x128xi32>
      %cst_15 = arith.constant -1.000000e+30 : f32
      %23 = vector.broadcast %cst_15 : f32 to vector<8x128xf32>
      %24 = arith.select %22, %18, %23 : vector<8x128xi1>, vector<8x128xf32>
      %cst_16 = arith.constant dense<0xFF800000> : vector<8xf32>
      %25 = vector.multi_reduction <maximumf>, %24, %cst_16 [1] : vector<8x128xf32> to vector<8xf32>
      %26 = vector.shape_cast %25 : vector<8xf32> to vector<8x1xf32>
      %27 = vector.broadcast %26 : vector<8x1xf32> to vector<8x128xf32>
      %28 = arith.subf %24, %27 : vector<8x128xf32>
      %29 = math.exp %28 : vector<8x128xf32>
      %cst_17 = arith.constant dense<0.000000e+00> : vector<8xf32>
      %30 = vector.multi_reduction <add>, %29, %cst_17 [1] : vector<8x128xf32> to vector<8xf32>
      %31 = vector.shape_cast %30 : vector<8xf32> to vector<8x1xf32>
      %32 = math.log %31 : vector<8x1xf32>
      %33 = arith.addf %26, %32 : vector<8x1xf32>
      %c0_18 = arith.constant 0 : index
      %c0_19 = arith.constant 0 : index
      %34 = vector.load %arg5[%c0_18, %c0_19] : memref<8x1xi32, #tpu.memory_space<vmem>>, vector<8x1xi32>
      %35 = vector.broadcast %34 : vector<8x1xi32> to vector<8x128xi32>
      %36 = arith.cmpi eq, %20, %35 : vector<8x128xi32>
      %cst_20 = arith.constant 0.000000e+00 : f32
      %37 = vector.broadcast %cst_20 : f32 to vector<8x128xf32>
      %38 = arith.select %36, %24, %37 : vector<8x128xi1>, vector<8x128xf32>
      %cst_21 = arith.constant dense<0.000000e+00> : vector<8xf32>
      %39 = vector.multi_reduction <add>, %38, %cst_21 [1] : vector<8x128xf32> to vector<8xf32>
      %40 = vector.shape_cast %39 : vector<8xf32> to vector<8x1xf32>
      %41 = arith.subf %33, %40 : vector<8x1xf32>
      %c0_22 = arith.constant 0 : index
      %c0_23 = arith.constant 0 : index
      %42 = vector.load %arg7[%c0_22, %c0_23] : memref<8x1xf32, #tpu.memory_space<vmem>>, vector<8x1xf32>
      tpu.vector_store %arg7[%c0_22, %c0_23], %41 {strides = array<i32>} : memref<8x1xf32, #tpu.memory_space<vmem>>, vector<8x1xf32>,
    } else {
    }
    return
  }
  func.func @transform_0(%arg0: i32, %arg1: i32) -> (i32, i32) {
    %c0_i32 = arith.constant 0 : i32
    return %arg0, %arg1 : i32, i32
  }
  func.func @transform_1(%arg0: i32, %arg1: i32) -> (i32, i32) {
    %c0_i32 = arith.constant 0 : i32
    %c0_i32_0 = arith.constant 0 : i32
    %c0_i32_1 = arith.constant 0 : i32
    return %c0_i32, %c0_i32_0 : i32, i32
  }
  func.func @transform_2(%arg0: i32, %arg1: i32) -> (i32, i32) {
    %c0_i32 = arith.constant 0 : i32
    %c0_i32_0 = arith.constant 0 : i32
    %c0_i32_1 = arith.constant 0 : i32
    return %c0_i32, %c0_i32_0 : i32, i32
  }
  func.func @transform_3(%arg0: i32, %arg1: i32) -> (i32, i32) {
    %c0_i32 = arith.constant 0 : i32
    %c0_i32_0 = arith.constant 0 : i32
    return %arg0, %c0_i32 : i32, i32
  }
  func.func @transform_4(%arg0: i32, %arg1: i32) -> (i32, i32) {
    %c0_i32 = arith.constant 0 : i32
    %c0_i32_0 = arith.constant 0 : i32
    return %arg0, %c0_i32 : i32, i32
  }
  func.func @transform_5(%arg0: i32, %arg1: i32) -> (i32, i32) {
    %c0_i32 = arith.constant 0 : i32
    %c0_i32_0 = arith.constant 0 : i32
    return %arg0, %c0_i32 : i32, i32
  }
}

</mosaic_0001>

<bundles_post_ra>
// kernel: tpu_custom_call.1
= control target key start
LH: loop header
LB: loop body
LE: loop exit
PB: predicated region body
PF: predicated region fallthrough
CT: control target
= control target key end

     0   :  { %11 = vsyncpa [#allocation3], 0  ;;  %s836_s0 = inlined_call_operand.hbm [shape: f32[8,1024], index: 0, kind: input, shape index: {}]   ;;  %s837_s1 = inlined_call_operand.hbm [shape: f32[128,1024], index: 1, kind: input, shape index: {}]   ;;  %s838_s2 = inlined_call_operand.vmem [shape: f32[1,128], index: 2, kind: input, shape index: {}]   ;;  %s839_s3 = inlined_call_operand.vmem [shape: s32[8,1], index: 3, kind: input, shape index: {}]   ;;  %s840_s4 = inlined_call_operand.hbm [shape: f32[8,128], index: 4, kind: output, shape index: {0}]   ;;  %s841_s5 = inlined_call_operand.vmem [shape: f32[8,1], index: 5, kind: output, shape index: {1}]  }
   0x1   :  { %12 = vsyncpa [#allocation6], 0 }
   0x2   :  { %13 = vsyncpa [#allocation4], 0  ;;  %s748_s18 = smov [#allocation2]   ;;  %s749_s20 = smov [#allocation5]  }
   0x3   :  { %s20_s19 = sshll.u32 %s748_s18, 4  ;;  %s29_s21 = sshll.u32 %s749_s20, 4  ;;  %s21_s19 = int_to_ptr.vmem [resolvable:$true] %s20_s19  ;;  %s784_s21 = int_to_ptr.vmem [resolvable:$true] %s29_s21 }
   0x4   :  { %s676_s24 = scalar_lea.hbm %s836_s0, 1024 }
   0x5   :  { %p677_p0 = scmp.ne.s32.totalorder %s836_s0, %s676_s24  ;;  %p680_p1 = scmp.lt.u32.totalorder %s676_s24, %s836_s0 }
   0x7   :  { %p682_p2 = pnand %p680_p1, %p677_p0 }
   0x9   :  { %685 = shalt.err (!%p682_p2)
}
   0xa   :  { %s686_s29 = scalar_lea.vmem %s21_s19, 1024  ;;  %p691_p4 = scmp.lt.s32.totalorder %s21_s19, %s21_s19 }
   0xb   :  { %p687_p3 = scmp.ne.s32.totalorder %s21_s19, %s686_s29  ;;  %p692_p5 = scmp.lt.s32.totalorder %s686_s29, %s686_s29 }
   0xd   :  { %p693_p6 = por %p692_p5, %p691_p4 }
   0xf   :  { %p694_p7 = pnand %p693_p6, %p687_p3 }
  0x11   :  { %697 = shalt.err (!%p694_p7)
}
  0x12   :  { %23 = dma.hbm_to_vmem [thread:$0]  %s836_s0, 1024, %s21_s19, [#allocation3]  }
  0x13   :  { %s698_s9 = scalar_lea.hbm %s837_s1, 16384 }
  0x14   :  { %p699_p8 = scmp.ne.s32.totalorder %s837_s1, %s698_s9  ;;  %p702_p9 = scmp.lt.u32.totalorder %s698_s9, %s837_s1 }
  0x16   :  { %p704_p10 = pnand %p702_p9, %p699_p8 }
  0x18   :  { %707 = shalt.err (!%p704_p10)
}
  0x19   :  { %s708_s14 = scalar_lea.vmem %s784_s21, 16384  ;;  %p713_p12 = scmp.lt.s32.totalorder %s784_s21, %s784_s21 }
  0x1a   :  { %p709_p11 = scmp.ne.s32.totalorder %s784_s21, %s708_s14  ;;  %p714_p13 = scmp.lt.s32.totalorder %s708_s14, %s708_s14 }
  0x1c   :  { %p715_p0 = por %p714_p13, %p713_p12 }
  0x1e   :  { %p716_p1 = pnand %p715_p0, %p709_p11 }
  0x20   :  { %719 = shalt.err (!%p716_p1)
}
  0x21   :  { %s750_s0 = smov 1024   ;;  %s751_s15 = smov 64  }
  0x22   :  { %35 = dma.hbm_to_vmem [thread:$0]  %s837_s1, 16384, %s784_s21, [#allocation6], %s750_s0, %s750_s0, %s751_s15  }
  0x23   :  { %742 = dma.done.wait [#allocation3], 1024  }
  0x24   :  { %743 = vsyncadd [#allocation3], 4294966272 }
  0x25   :  { %744 = dma.done.wait [#allocation6], 16384  }
  0x26   :  { %745 = vsyncadd [#allocation6], 4294950912  ;;  %v57_v0 = vld [vmem:[#allocation5 + $0x8] sm:$0xff]  ;;  %v56_v2 = vld [vmem:[#allocation5] sm:$0xff] }
  0x27   :  { %v65_v1 = vld [vmem:[#allocation5 + $0x48] sm:$0xff]  ;;  %v64_v4 = vld [vmem:[#allocation5 + $0x40] sm:$0xff]  ;;  %v59_v5 = vld [vmem:[#allocation5 + $0x18] sm:$0xff] }
  0x28   :  { %v536_v3 = vpack.c.bf16 %v65_v1, %v57_v0  ;;  %v67_v6 = vld [vmem:[#allocation5 + $0x58] sm:$0xff]  ;;  %v538_v7 = vpack.c.bf16 %v64_v4, %v56_v2  ;;  %v58_v9 = vld [vmem:[#allocation5 + $0x10] sm:$0xff]  ;;  %v73_v11 = vld [vmem:[#allocation5 + $0x88] sm:$0xff] }
  0x29   :  { %v568_v8 = vpack.c.bf16 %v67_v6, %v59_v5  ;;  %v66_v10 = vld [vmem:[#allocation5 + $0x50] sm:$0xff]  ;;  %v81_v13 = vld [vmem:[#allocation5 + $0xc8] sm:$0xff]  ;;  %v75_v15 = vld [vmem:[#allocation5 + $0x98] sm:$0xff] }
  0x2a   :  { %537 = vmatprep.subr.bf16.mxu0 %v536_v3  ;;  %v570_v12 = vpack.c.bf16 %v66_v10, %v58_v9  ;;  %v540_v14 = vpack.c.bf16 %v81_v13, %v73_v11  ;;  %v83_v16 = vld [vmem:[#allocation5 + $0xd8] sm:$0xff]  ;;  %v72_v17 = vld [vmem:[#allocation5 + $0x80] sm:$0xff]  ;;  %v74_v20 = vld [vmem:[#allocation5 + $0x90] sm:$0xff] }
  0x2b   :  { %539 = vmatpush1.bf16.xpose.msra.mxu0 %v538_v7  ;;  %569 = vmatprep.subr.bf16.mxu1 %v568_v8  ;;  %v80_v18 = vld [vmem:[#allocation5 + $0xc0] sm:$0xff]  ;;  %v572_v19 = vpack.c.bf16 %v83_v16, %v75_v15  ;;  %v82_v21 = vld [vmem:[#allocation5 + $0xd0] sm:$0xff]  ;;  %v89_v22 = vld [vmem:[#allocation5 + $0x108] sm:$0xff] }
  0x2c   :  { %571 = vmatpush1.bf16.xpose.msra.mxu1 %v570_v12  ;;  %541 = vmatprep.subr.bf16.mxu0 %v540_v14  ;;  %v97_v23 = vld [vmem:[#allocation5 + $0x148] sm:$0xff]  ;;  %v91_v24 = vld [vmem:[#allocation5 + $0x118] sm:$0xff]  ;;  %v542_v26 = vpack.c.bf16 %v80_v18, %v72_v17  ;;  %v574_v27 = vpack.c.bf16 %v82_v21, %v74_v20  ;;  %v88_v30 = vld [vmem:[#allocation5 + $0x100] sm:$0xff] }
  0x2d   :  { %573 = vmatprep.subr.bf16.mxu1 %v572_v19  ;;  %v99_v25 = vld [vmem:[#allocation5 + $0x158] sm:$0xff]  ;;  %v544_v28 = vpack.c.bf16 %v97_v23, %v89_v22  ;;  %v96_v31 = vld [vmem:[#allocation5 + $0x140] sm:$0xff]  ;;  %v90_v32 = vld [vmem:[#allocation5 + $0x110] sm:$0xff] }
  0x2e   :  { %v576_v29 = vpack.c.bf16 %v99_v25, %v91_v24  ;;  %v98_v33 = vld [vmem:[#allocation5 + $0x150] sm:$0xff]  ;;  %v105_v34 = vld [vmem:[#allocation5 + $0x188] sm:$0xff]  ;;  %v107_v36 = vld [vmem:[#allocation5 + $0x198] sm:$0xff]  ;;  %v546_v38 = vpack.c.bf16 %v96_v31, %v88_v30 }
  0x2f   :  { %v113_v35 = vld [vmem:[#allocation5 + $0x1c8] sm:$0xff]  ;;  %v115_v37 = vld [vmem:[#allocation5 + $0x1d8] sm:$0xff]  ;;  %v578_v39 = vpack.c.bf16 %v98_v33, %v90_v32  ;;  %v104_v42 = vld [vmem:[#allocation5 + $0x180] sm:$0xff] }
  0x30   :  { %v548_v40 = vpack.c.bf16 %v113_v35, %v105_v34  ;;  %v580_v41 = vpack.c.bf16 %v115_v37, %v107_v36  ;;  %v112_v43 = vld [vmem:[#allocation5 + $0x1c0] sm:$0xff]  ;;  %v106_v44 = vld [vmem:[#allocation5 + $0x190] sm:$0xff]  ;;  %v186_v46 = vld [vmem:[#allocation2 + $0x8] sm:$0xff] }
  0x31   :  { %v114_v45 = vld [vmem:[#allocation5 + $0x1d0] sm:$0xff]  ;;  %v121_v47 = vld [vmem:[#allocation5 + $0x208] sm:$0xff]  ;;  %257 = vmatprep.mubr.f32.mxu0 %v186_v46  ;;  %v188_v49 = vld [vmem:[#allocation2 + $0x18] sm:$0xff]  ;;  %v550_v52 = vpack.c.bf16 %v112_v43, %v104_v42 }
  0x32   :  { %v129_v48 = vld [vmem:[#allocation5 + $0x248] sm:$0xff]  ;;  %v123_v50 = vld [vmem:[#allocation5 + $0x218] sm:$0xff]  ;;  %327 = vmatprep.mubr.f32.mxu1 %v188_v49  ;;  %v582_v53 = vpack.c.bf16 %v114_v45, %v106_v44  ;;  %v120_v56 = vld [vmem:[#allocation5 + $0x200] sm:$0xff] }
  0x33   :  { %543 = vmatpush1.bf16.xpose.msra.mxu0 %v542_v26  ;;  %v131_v51 = vld [vmem:[#allocation5 + $0x258] sm:$0xff]  ;;  %v552_v54 = vpack.c.bf16 %v129_v48, %v121_v47  ;;  %v128_v57 = vld [vmem:[#allocation5 + $0x240] sm:$0xff]  ;;  %v122_v58 = vld [vmem:[#allocation5 + $0x210] sm:$0xff] }
  0x34   :  { %575 = vmatpush1.bf16.xpose.msra.mxu1 %v574_v27  ;;  %545 = vmatprep.subr.bf16.mxu0 %v544_v28  ;;  %v584_v55 = vpack.c.bf16 %v131_v51, %v123_v50  ;;  %v130_v59 = vld [vmem:[#allocation5 + $0x250] sm:$0xff]  ;;  %v137_v60 = vld [vmem:[#allocation5 + $0x288] sm:$0xff]  ;;  %v139_v62 = vld [vmem:[#allocation5 + $0x298] sm:$0xff]  ;;  %v554_v0 = vpack.c.bf16 %v128_v57, %v120_v56 }
  0x35   :  { %577 = vmatprep.subr.bf16.mxu1 %v576_v29  ;;  %v145_v61 = vld [vmem:[#allocation5 + $0x2c8] sm:$0xff]  ;;  %v147_v63 = vld [vmem:[#allocation5 + $0x2d8] sm:$0xff]  ;;  %v586_v1 = vpack.c.bf16 %v130_v59, %v122_v58  ;;  %v136_v4 = vld [vmem:[#allocation5 + $0x280] sm:$0xff] }
  0x36   :  { %v556_v2 = vpack.c.bf16 %v145_v61, %v137_v60  ;;  %v588_v3 = vpack.c.bf16 %v147_v63, %v139_v62  ;;  %v144_v5 = vld [vmem:[#allocation5 + $0x2c0] sm:$0xff]  ;;  %v138_v6 = vld [vmem:[#allocation5 + $0x290] sm:$0xff]  ;;  %v153_v8 = vld [vmem:[#allocation5 + $0x308] sm:$0xff] }
  0x37   :  { %v146_v7 = vld [vmem:[#allocation5 + $0x2d0] sm:$0xff]  ;;  %v161_v9 = vld [vmem:[#allocation5 + $0x348] sm:$0xff]  ;;  %v155_v10 = vld [vmem:[#allocation5 + $0x318] sm:$0xff]  ;;  %v558_v12 = vpack.c.bf16 %v144_v5, %v136_v4 }
  0x38   :  { %v163_v11 = vld [vmem:[#allocation5 + $0x358] sm:$0xff]  ;;  %v590_v13 = vpack.c.bf16 %v146_v7, %v138_v6  ;;  %v560_v14 = vpack.c.bf16 %v161_v9, %v153_v8  ;;  %v152_v16 = vld [vmem:[#allocation5 + $0x300] sm:$0xff]  ;;  %v154_v18 = vld [vmem:[#allocation5 + $0x310] sm:$0xff] }
  0x39   :  { %v592_v15 = vpack.c.bf16 %v163_v11, %v155_v10  ;;  %v160_v17 = vld [vmem:[#allocation5 + $0x340] sm:$0xff]  ;;  %v162_v19 = vld [vmem:[#allocation5 + $0x350] sm:$0xff]  ;;  %v169_v20 = vld [vmem:[#allocation5 + $0x388] sm:$0xff] }
  0x3a   :  { %v177_v21 = vld [vmem:[#allocation5 + $0x3c8] sm:$0xff]  ;;  %v171_v22 = vld [vmem:[#allocation5 + $0x398] sm:$0xff]  ;;  %v562_v24 = vpack.c.bf16 %v160_v17, %v152_v16  ;;  %v594_v25 = vpack.c.bf16 %v162_v19, %v154_v18  ;;  %v168_v28 = vld [vmem:[#allocation5 + $0x380] sm:$0xff] }
  0x3b   :  { %547 = vmatpush1.bf16.xpose.msra.mxu0 %v546_v38  ;;  %v179_v23 = vld [vmem:[#allocation5 + $0x3d8] sm:$0xff]  ;;  %v564_v26 = vpack.c.bf16 %v177_v21, %v169_v20  ;;  %v176_v29 = vld [vmem:[#allocation5 + $0x3c0] sm:$0xff]  ;;  %v170_v30 = vld [vmem:[#allocation5 + $0x390] sm:$0xff] }
  0x3c   :  { %579 = vmatpush1.bf16.xpose.msra.mxu1 %v578_v39  ;;  %549 = vmatprep.subr.bf16.mxu0 %v548_v40  ;;  %v596_v27 = vpack.c.bf16 %v179_v23, %v171_v22  ;;  %v178_v31 = vld [vmem:[#allocation5 + $0x3d0] sm:$0xff]  ;;  %v61_v32 = vld [vmem:[#allocation5 + $0x28] sm:$0xff]  ;;  %v63_v34 = vld [vmem:[#allocation5 + $0x38] sm:$0xff]  ;;  %v566_v36 = vpack.c.bf16 %v176_v29, %v168_v28 }
  0x3d   :  { %581 = vmatprep.subr.bf16.mxu1 %v580_v41  ;;  %v69_v33 = vld [vmem:[#allocation5 + $0x68] sm:$0xff]  ;;  %v71_v35 = vld [vmem:[#allocation5 + $0x78] sm:$0xff]  ;;  %v598_v37 = vpack.c.bf16 %v178_v31, %v170_v30  ;;  %v60_v40 = vld [vmem:[#allocation5 + $0x20] sm:$0xff] }
  0x3e   :  { %v600_v38 = vpack.c.bf16 %v69_v33, %v61_v32  ;;  %v632_v39 = vpack.c.bf16 %v71_v35, %v63_v34  ;;  %v68_v41 = vld [vmem:[#allocation5 + $0x60] sm:$0xff]  ;;  %v62_v42 = vld [vmem:[#allocation5 + $0x30] sm:$0xff]  ;;  %v77_v44 = vld [vmem:[#allocation5 + $0xa8] sm:$0xff] }
  0x3f   :  { %v70_v43 = vld [vmem:[#allocation5 + $0x70] sm:$0xff]  ;;  %v85_v45 = vld [vmem:[#allocation5 + $0xe8] sm:$0xff]  ;;  %v79_v46 = vld [vmem:[#allocation5 + $0xb8] sm:$0xff]  ;;  %v602_v49 = vpack.c.bf16 %v68_v41, %v60_v40 }
  0x40   :  { %v87_v47 = vld [vmem:[#allocation5 + $0xf8] sm:$0xff]  ;;  %v185_v48 = vld [vmem:[#allocation2] sm:$0xff]  ;;  %v187_v50 = vld [vmem:[#allocation2 + $0x10] sm:$0xff]  ;;  %v634_v51 = vpack.c.bf16 %v70_v43, %v62_v42 }
  0x41   :  { %v76_v56 = vld [vmem:[#allocation5 + $0xa0] sm:$0xff]  ;;  %v78_v58 = vld [vmem:[#allocation5 + $0xb0] sm:$0xff]  ;;  %v93_v60 = vld [vmem:[#allocation5 + $0x128] sm:$0xff] }
  0x42   :  { %v84_v57 = vld [vmem:[#allocation5 + $0xe0] sm:$0xff]  ;;  %v86_v59 = vld [vmem:[#allocation5 + $0xf0] sm:$0xff]  ;;  %v101_v61 = vld [vmem:[#allocation5 + $0x168] sm:$0xff] }
  0x43   :  { %551 = vmatpush1.bf16.xpose.msra.mxu0 %v550_v52  ;;  %v604_v52 = vpack.c.bf16 %v85_v45, %v77_v44  ;;  %v95_v62 = vld [vmem:[#allocation5 + $0x138] sm:$0xff]  ;;  %v92_v4 = vld [vmem:[#allocation5 + $0x120] sm:$0xff]  ;;  %v94_v6 = vld [vmem:[#allocation5 + $0x130] sm:$0xff] }
  0x44   :  { %583 = vmatpush1.bf16.xpose.msra.mxu1 %v582_v53  ;;  %553 = vmatprep.subr.bf16.mxu0 %v552_v54  ;;  %v636_v53 = vpack.c.bf16 %v87_v47, %v79_v46  ;;  %v190_v54 = vld [vmem:[#allocation2 + $0x28] sm:$0xff]  ;;  %v103_v63 = vld [vmem:[#allocation5 + $0x178] sm:$0xff]  ;;  %v100_v5 = vld [vmem:[#allocation5 + $0x160] sm:$0xff] }
  0x45   :  { %585 = vmatprep.subr.bf16.mxu1 %v584_v55  ;;  %v192_v55 = vld [vmem:[#allocation2 + $0x38] sm:$0xff]  ;;  %v102_v7 = vld [vmem:[#allocation5 + $0x170] sm:$0xff]  ;;  %v109_v8 = vld [vmem:[#allocation5 + $0x1a8] sm:$0xff] }
  0x46   :  { %v117_v9 = vld [vmem:[#allocation5 + $0x1e8] sm:$0xff]  ;;  %v111_v10 = vld [vmem:[#allocation5 + $0x1b8] sm:$0xff]  ;;  %v108_v16 = vld [vmem:[#allocation5 + $0x1a0] sm:$0xff] }
  0x47   :  { %v119_v11 = vld [vmem:[#allocation5 + $0x1f8] sm:$0xff]  ;;  %v116_v17 = vld [vmem:[#allocation5 + $0x1e0] sm:$0xff]  ;;  %v110_v18 = vld [vmem:[#allocation5 + $0x1b0] sm:$0xff] }
  0x48   :  { %v118_v19 = vld [vmem:[#allocation5 + $0x1f0] sm:$0xff]  ;;  %v125_v20 = vld [vmem:[#allocation5 + $0x228] sm:$0xff]  ;;  %v127_v22 = vld [vmem:[#allocation5 + $0x238] sm:$0xff] }
  0x49   :  { %v133_v21 = vld [vmem:[#allocation5 + $0x268] sm:$0xff]  ;;  %v135_v23 = vld [vmem:[#allocation5 + $0x278] sm:$0xff]  ;;  %v124_v28 = vld [vmem:[#allocation5 + $0x220] sm:$0xff] }
  0x4a   :  { %v132_v29 = vld [vmem:[#allocation5 + $0x260] sm:$0xff]  ;;  %v126_v30 = vld [vmem:[#allocation5 + $0x230] sm:$0xff]  ;;  %v141_v32 = vld [vmem:[#allocation5 + $0x2a8] sm:$0xff] }
  0x4b   :  { %555 = vmatpush1.bf16.xpose.msra.mxu0 %v554_v0  ;;  %v606_v0 = vpack.c.bf16 %v84_v57, %v76_v56  ;;  %v134_v31 = vld [vmem:[#allocation5 + $0x270] sm:$0xff]  ;;  %v149_v33 = vld [vmem:[#allocation5 + $0x2e8] sm:$0xff]  ;;  %v143_v34 = vld [vmem:[#allocation5 + $0x2b8] sm:$0xff] }
  0x4c   :  { %587 = vmatpush1.bf16.xpose.msra.mxu1 %v586_v1  ;;  %557 = vmatprep.subr.bf16.mxu0 %v556_v2  ;;  %v638_v1 = vpack.c.bf16 %v86_v59, %v78_v58  ;;  %v608_v2 = vpack.c.bf16 %v101_v61, %v93_v60  ;;  %v151_v35 = vld [vmem:[#allocation5 + $0x2f8] sm:$0xff]  ;;  %v140_v40 = vld [vmem:[#allocation5 + $0x2a0] sm:$0xff]  ;;  %v142_v42 = vld [vmem:[#allocation5 + $0x2b0] sm:$0xff] }
  0x4d   :  { %589 = vmatprep.subr.bf16.mxu1 %v588_v3  ;;  %v640_v3 = vpack.c.bf16 %v103_v63, %v95_v62  ;;  %v148_v41 = vld [vmem:[#allocation5 + $0x2e0] sm:$0xff]  ;;  %v150_v43 = vld [vmem:[#allocation5 + $0x2f0] sm:$0xff]  ;;  %v157_v44 = vld [vmem:[#allocation5 + $0x328] sm:$0xff] }
  0x4e   :  { %v165_v45 = vld [vmem:[#allocation5 + $0x368] sm:$0xff]  ;;  %v159_v46 = vld [vmem:[#allocation5 + $0x338] sm:$0xff] }
  0x4f   :  { %v167_v47 = vld [vmem:[#allocation5 + $0x378] sm:$0xff]  ;;  %v173_v56 = vld [vmem:[#allocation5 + $0x3a8] sm:$0xff] }
  0x50   :  { %v181_v57 = vld [vmem:[#allocation5 + $0x3e8] sm:$0xff]  ;;  %v175_v58 = vld [vmem:[#allocation5 + $0x3b8] sm:$0xff] }
  0x51   :  { %v183_v59 = vld [vmem:[#allocation5 + $0x3f8] sm:$0xff]  ;;  %v628_v62 = vpack.c.bf16 %v181_v57, %v173_v56 }
  0x52   :  { %v660_v63 = vpack.c.bf16 %v183_v59, %v175_v58 }
  0x53   :  { %559 = vmatpush1.bf16.xpose.msra.mxu0 %v558_v12  ;;  %v610_v12 = vpack.c.bf16 %v100_v5, %v92_v4 }
  0x54   :  { %591 = vmatpush1.bf16.xpose.msra.mxu1 %v590_v13  ;;  %561 = vmatprep.subr.bf16.mxu0 %v560_v14  ;;  %v642_v13 = vpack.c.bf16 %v102_v7, %v94_v6  ;;  %v612_v14 = vpack.c.bf16 %v117_v9, %v109_v8  ;;  %v189_v6 = vld [vmem:[#allocation2 + $0x20] sm:$0xff]  ;;  %v191_v7 = vld [vmem:[#allocation2 + $0x30] sm:$0xff]  ;;  %v752_v8 = vmov 0  }
  0x55   :  { %593 = vmatprep.subr.bf16.mxu1 %v592_v15  ;;  %v644_v15 = vpack.c.bf16 %v119_v11, %v111_v10  ;;  %671 = vset.pattern.permute.xlu0 %v752_v8 }
  0x5b   :  { %563 = vmatpush1.bf16.xpose.msra.mxu0 %v562_v24  ;;  %v614_v24 = vpack.c.bf16 %v116_v17, %v108_v16 }
  0x5c   :  { %595 = vmatpush1.bf16.xpose.msra.mxu1 %v594_v25  ;;  %565 = vmatprep.subr.bf16.mxu0 %v564_v26  ;;  %v646_v25 = vpack.c.bf16 %v118_v19, %v110_v18  ;;  %v616_v26 = vpack.c.bf16 %v133_v21, %v125_v20 }
  0x5d   :  { %597 = vmatprep.subr.bf16.mxu1 %v596_v27  ;;  %v648_v27 = vpack.c.bf16 %v135_v23, %v127_v22  ;;  %v535_v22 = vld [vmem:[%s838_s2] ss:$0 sm:$0xff]  ;;  %s753_s2 = smov [#allocation7]  }
  0x5e   :  { %s519_s21 = sshll.u32 %s753_s2, 4  ;;  %s520_s21 = int_to_ptr.vmem [resolvable:$true] %s519_s21 }
  0x5f   :  { %s720_s22 = scalar_lea.vmem %s520_s21, 128  ;;  %p725_p3 = scmp.lt.s32.totalorder %s520_s21, %s520_s21 }
  0x60   :  { %p721_p2 = scmp.ne.s32.totalorder %s520_s21, %s720_s22  ;;  %p726_p4 = scmp.lt.s32.totalorder %s720_s22, %s720_s22 }
  0x62   :  { %p727_p5 = por %p726_p4, %p725_p3 }
  0x63   :  { %567 = vmatpush1.bf16.xpose.msra.mxu0 %v566_v36  ;;  %v618_v36 = vpack.c.bf16 %v132_v29, %v124_v28 }
  0x64   :  { %599 = vmatpush1.bf16.xpose.msra.mxu1 %v598_v37  ;;  %601 = vmatprep.subr.bf16.mxu0 %v600_v38  ;;  %v650_v37 = vpack.c.bf16 %v134_v31, %v126_v30  ;;  %v620_v38 = vpack.c.bf16 %v149_v33, %v141_v32  ;;  %p728_p6 = pnand %p727_p5, %p721_p2 }
  0x65   :  { %633 = vmatprep.subr.bf16.mxu1 %v632_v39  ;;  %v652_v39 = vpack.c.bf16 %v151_v35, %v143_v34 }
  0x6a   :  { %258 = vmatmul.mubr.f32.vlgmr.msra.gmra.mrb[0].mxu0 %v185_v48  ;;  %v622_v48 = vpack.c.bf16 %v148_v41, %v140_v40 }
  0x6b   :  { %328 = vmatmul.mubr.f32.vlgmr.msra.gmra.mrb[0].mxu1 %v187_v50  ;;  %603 = vmatpush1.bf16.xpose.msra.mxu0 %v602_v49  ;;  %v654_v49 = vpack.c.bf16 %v150_v43, %v142_v42  ;;  %v624_v50 = vpack.c.bf16 %v165_v45, %v157_v44 }
  0x6c   :  { %635 = vmatpush1.bf16.xpose.msra.mxu1 %v634_v51  ;;  %605 = vmatprep.subr.bf16.mxu0 %v604_v52  ;;  %v656_v51 = vpack.c.bf16 %v167_v47, %v159_v46  ;;  %v156_v52 = vld [vmem:[#allocation5 + $0x320] sm:$0xff] }
  0x6d   :  { %637 = vmatprep.subr.bf16.mxu1 %v636_v53  ;;  %397 = vmatprep.mubr.f32.mxu0 %v190_v54  ;;  %v164_v53 = vld [vmem:[#allocation5 + $0x360] sm:$0xff]  ;;  %v158_v54 = vld [vmem:[#allocation5 + $0x330] sm:$0xff] }
  0x6e   :  { %467 = vmatprep.mubr.f32.mxu1 %v192_v55  ;;  %v166_v55 = vld [vmem:[#allocation5 + $0x370] sm:$0xff]  ;;  %v626_v60 = vpack.c.bf16 %v164_v53, %v156_v52 }
  0x6f   :  { %v658_v61 = vpack.c.bf16 %v166_v55, %v158_v54 }
  0x73   :  { %607 = vmatpush1.bf16.xpose.msra.mxu0 %v606_v0  ;;  %v172_v0 = vld [vmem:[#allocation5 + $0x3a0] sm:$0xff] }
  0x74   :  { %639 = vmatpush1.bf16.xpose.msra.mxu1 %v638_v1  ;;  %609 = vmatprep.subr.bf16.mxu0 %v608_v2  ;;  %v180_v1 = vld [vmem:[#allocation5 + $0x3e0] sm:$0xff]  ;;  %v174_v2 = vld [vmem:[#allocation5 + $0x3b0] sm:$0xff] }
  0x75   :  { %641 = vmatprep.subr.bf16.mxu1 %v640_v3  ;;  %v182_v3 = vld [vmem:[#allocation5 + $0x3f0] sm:$0xff]  ;;  %v630_v4 = vpack.c.bf16 %v180_v1, %v172_v0 }
  0x76   :  { %v662_v5 = vpack.c.bf16 %v182_v3, %v174_v2 }
  0x7b   :  { %611 = vmatpush1.bf16.xpose.msra.mxu0 %v610_v12 }
  0x7c   :  { %643 = vmatpush1.bf16.xpose.msra.mxu1 %v642_v13  ;;  %613 = vmatprep.subr.bf16.mxu0 %v612_v14  ;;  %v488_v14 = vlaneseq }
  0x7d   :  { %645 = vmatprep.subr.bf16.mxu1 %v644_v15 }
  0x7e   :  { %v489_v20 = vand.u32 127, %v488_v14 }
  0x80   :  { %vm490_vm0 = vcmp.lt.s32.totalorder %v489_v20, 8 }
  0x83   :  { %615 = vmatpush1.bf16.xpose.msra.mxu0 %v614_v24 }
  0x84   :  { %647 = vmatpush1.bf16.xpose.msra.mxu1 %v646_v25  ;;  %617 = vmatprep.subr.bf16.mxu0 %v616_v26  ;;  %v502_v25 = vld [vmem:[%s839_s3] sm:$0xff] }
  0x85   :  { %649 = vmatprep.subr.bf16.mxu1 %v648_v27 }
  0x8b   :  { %619 = vmatpush1.bf16.xpose.msra.mxu0 %v618_v36 }
  0x8c   :  { %651 = vmatpush1.bf16.xpose.msra.mxu1 %v650_v37  ;;  %621 = vmatprep.subr.bf16.mxu0 %v620_v38 }
  0x8d   :  { %653 = vmatprep.subr.bf16.mxu1 %v652_v39 }
  0x93   :  { %623 = vmatpush1.bf16.xpose.msra.mxu0 %v622_v48 }
  0x94   :  { %655 = vmatpush1.bf16.xpose.msra.mxu1 %v654_v49  ;;  %625 = vmatprep.subr.bf16.mxu0 %v624_v50 }
  0x95   :  { %657 = vmatprep.subr.bf16.mxu1 %v656_v51 }
  0x9b   :  { %627 = vmatpush1.bf16.xpose.msra.mxu0 %v626_v60 }
  0x9c   :  { %659 = vmatpush1.bf16.xpose.msra.mxu1 %v658_v61  ;;  %629 = vmatprep.subr.bf16.mxu0 %v628_v62 }
  0x9d   :  { %661 = vmatprep.subr.bf16.mxu1 %v660_v63 }
  0xa3   :  { %631 = vmatpush1.bf16.xpose.msra.mxu0 %v630_v4 }
  0xa4   :  { %663 = vmatpush1.bf16.xpose.msra.mxu1 %v662_v5 }
  0xaa   :  { %398 = vmatmul.mubr.f32.vlgmr.msra.gmra.mrb[2].mxu0 %v189_v6 }
  0xab   :  { %468 = vmatmul.mubr.f32.vlgmr.msra.gmra.mrb[2].mxu1 %v191_v7 }
 0x13d   :  { %v259_v9 = vpop.f32.mrb[0].mxu0 }
 0x13e   :  { %v261_v10 = vpop.f32.mrb[1].mxu0  ;;  %v329_v11 = vpop.f32.mrb[0].mxu1 }
 0x13f   :  { %v330_v12 = vadd.f32 %v329_v11, %v259_v9  ;;  %v331_v13 = vpop.f32.mrb[1].mxu1 }
 0x17d   :  { %v399_v15 = vpop.f32.mrb[2].mxu0 }
 0x17e   :  { %v400_v16 = vadd.f32 %v399_v15, %v330_v12  ;;  %v401_v17 = vpop.f32.mrb[3].mxu0  ;;  %v469_v18 = vpop.f32.mrb[2].mxu1 }
 0x17f   :  { %v471_v19 = vpop.f32.mrb[3].mxu1 }
 0x180   :  { %v470_v21 = vadd.f32 %v469_v18, %v400_v16 }
 0x182   :  { %v486_v23 = vadd.f32 %v535_v22, %v470_v21 }
 0x184   :  { %v491_v24 = vsel %vm490_vm0, %v486_v23, -1e+30  ;;  %487 = vst [vmem:[#allocation7] sm:$0xff] %v486_v23 }
 0x185   :  { %492 = vmax.xlane.f32.xlu0 %v491_v24 }
 0x19b   :  { %504 = vperm.xlu0 %671, %v502_v25  }
 0x212   :  { %v493_v26 = vpop.xlane.xlu0 %492 }
 0x213   :  { %v494_v27 = vsub.f32 %v491_v24, %v493_v26 }
 0x215   :  { %v495_v28 = vmul.f32 1.442695, %v494_v27 }
 0x217   :  { %672 = vpow2.f32 %v495_v28 }
 0x21a   :  { %v505_v29 = vpop.permute.xlu0 %504 }
 0x21b   :  { %vm506_vm1 = vcmp.eq.s32.totalorder %v489_v20, %v505_v29 }
 0x21c   :  { %v507_v31 = vsel %vm506_vm1, %v491_v24, 0.0 }
 0x221   :  { %v673_v30 = vpop.eup %672 }
 0x222   :  { %497 = vadd.xlane.f32.xlu1 %v673_v30 }
 0x226   :  { %508 = vadd.xlane.f32.xlu1 %v507_v31 }
 0x227   :  { %731 = shalt.err (!%p728_p6)
}
 0x228   :  { %s732_s24 = scalar_lea.hbm %s840_s4, 128 }
 0x229   :  { %p733_p7 = scmp.ne.s32.totalorder %s840_s4, %s732_s24  ;;  %p736_p8 = scmp.lt.u32.totalorder %s732_s24, %s840_s4 }
 0x22b   :  { %p738_p9 = pnand %p736_p8, %p733_p7 }
 0x22d   :  { %741 = shalt.err (!%p738_p9)
}
 0x22e   :  { %522 = dma.vmem_to_hbm [thread:$0]  %s520_s21, 128, %s840_s4, [#allocation4]   ;;  %vm511_vm2 = vcmask 7168  }
 0x2af   :  { %v498_v32 = vpop.xlane.xlu1 %497 }
 0x2b0   :  { %674 = vlog2.f32 %v498_v32 }
 0x2b3   :  { %v509_v36 = vpop.xlane.xlu1 %508 }
 0x2ba   :  { %v675_v33 = vpop.eup %674 }
 0x2bb   :  { %v500_v34 = vmul.f32 0.6931472, %v675_v33 }
 0x2bd   :  { %v501_v35 = vadd.f32 %v500_v34, %v493_v26 }
 0x2bf   :  { %v510_v37 = vsub.f32 %v501_v35, %v509_v36 }
 0x2c1   :  { %512 = vst.msk [vmem:[%s841_s5] sm:$0xff] %vm511_vm2, %v510_v37 }
 0x2c2   :  { %746 = dma.done.wait [#allocation4], 128  }
 0x2c3   :  { %747 = vsyncadd [#allocation4], 4294967168 }
 0x2c4   :  { %530 = vsyncpa [#allocation3], 1 }
 0x2c5   :  { %531 = vsyncpa [#allocation6], 1 }
 0x2c6   :  { %532 = vsyncpa [#allocation4], 1 }

</bundles_post_ra>
